<compile_context>
chip_gen: v5e
topology: v5e:2x2
jax: 0.10.0
libtpu: 0.0.40
codegen_flags: <defaults>
</compile_context>

<pallas_src>
import jax
import jax.numpy as jnp
from jax.experimental import pallas as pl
from jax.experimental.pallas import tpu as pltpu


# ----------------------------- fused Pallas kernel ------------------------------

def _fused_receiver_kernel(pT_ref, wc_ref, bc_ref, rm_ref, bred_ref, msg_ref,
                           w1i_ref, w1m_ref, b1_ref, w2_ref, b2_ref,
                           w3_ref, b3_ref, o_ref):
    """One batch element of the CoordinatePredictorReceiver forward.

    pT   : (hw, K_pad)       im2col patches for this batch element
    wc   : (K_pad, C_ENC)    conv weight (zero-padded K)      bc : (1, C_ENC)
    rm   : (C_ENC, hw, EMB)  reduction weight (UNTILED over batch)
    bred : (1, EMB)
    msg  : (1, MSG)          this batch element's message row
    w1i/w1m/b1, w2/b2, w3/b3 : classifier weights (torch.cat fused by splitting w1;
                               w3/b3 zero-padded to a 128-wide lane-dense output)
    o    : (1, OUT_PAD)
    """
    # --- ImageEncoder: conv-as-matmul + bias + ReLU (SSA value, no scratch) ---
    conv_t = jnp.dot(pT_ref[...], wc_ref[...],
                     preferred_element_type=jnp.float32)            # (hw, C_ENC)
    conv_t = jnp.maximum(conv_t + bc_ref[...], 0.0)

    # --- reduction = nn.Flatten + Linear (no sel mask, untiled weight) -------
    # red[e] = sum_{c,s} conv_t[s, c] * rm[c, s, e]; done as C_ENC VPU
    # multiply-adds into z = (hw, EMB), then one sublane reduction.
    n_ch = rm_ref.shape[0]
    z = conv_t[:, 0:1] * rm_ref[0]                                   # (hw, EMB)
    for c in range(1, n_ch):                    # static unroll; VPU only (no MXU pushes)
        z = z + conv_t[:, c:c + 1] * rm_ref[c]
    red = jnp.sum(z, axis=0, keepdims=True) + bred_ref[...]          # (1, EMB)

    # --- torch.cat((reduced, message), dim=1) + CoordinateClassifier MLP -----
    h = jnp.dot(red, w1i_ref[...], preferred_element_type=jnp.float32)
    h = h + jnp.dot(msg_ref[...], w1m_ref[...], preferred_element_type=jnp.float32)
    h = jnp.maximum(h + b1_ref[...], 0.0)
    h = jnp.maximum(jnp.dot(h, w2_ref[...], preferred_element_type=jnp.float32)
                    + b2_ref[...], 0.0)
    o_ref[...] = (jnp.dot(h, w3_ref[...], preferred_element_type=jnp.float32)
                  + b3_ref[...])                                     # (1, OUT_PAD)


# ------------------------- one-time parameter preparation ------------------------

def prepare_params(params, h_out, w_out):
    """One-time weight layout plumbing (reshape / permute / cat-split / pad)."""
    enc_w, enc_b = params["enc_w"], params["enc_b"]
    red_w, red_b = params["red_w"], params["red_b"]
    c_enc, c_in, kh, kw = enc_w.shape
    k = c_in * kh * kw
    k_pad = ((k + 7) // 8) * 8                       # sublane-align the contraction dim
    emb, flat = red_w.shape
    hw = h_out * w_out
    assert flat == c_enc * hw

    wc = jnp.pad(enc_w.reshape(c_enc, k), ((0, 0), (0, k_pad - k))).T  # (K_pad, C_ENC)
    bc = enc_b.reshape(1, c_enc)

    # torch Flatten on NCHW conv output: flat index j = c*hw + (y*Wo + x).
    # Keep the weight UNTILED over batch: (C_ENC, hw, EMB).
    rm = jnp.transpose(red_w.reshape(emb, c_enc, hw), (1, 2, 0))
    bred = red_b.reshape(1, emb)

    w1 = params["cls_w1"]                            # (CLS, EMB+MSG); cat fused by split
    w1i = w1[:, :emb].T                              # (EMB, CLS)
    w1m = w1[:, emb:].T                              # (MSG, CLS)

    # lane-dense final layer: pad the 2 coordinate outputs into a 128-wide block
    w3_t = params["cls_w3"].T                        # (CLS, N_OUT)
    cls_dim, n_out = w3_t.shape
    out_pad = 128
    w3 = jnp.zeros((cls_dim, out_pad), jnp.float32).at[:, :n_out].set(w3_t)
    b3 = jnp.zeros((1, out_pad), jnp.float32).at[:, :n_out].set(params["cls_b3"][None, :])

    return dict(wc=wc, bc=bc, rm=rm, bred=bred,
                w1i=w1i, w1m=w1m, b1=params["cls_b1"].reshape(1, -1),
                w2=params["cls_w2"].T, b2=params["cls_b2"].reshape(1, -1),
                w3=w3, b3=b3)


# ------------------------------------ wrapper ------------------------------------

def coordinate_predictor_receiver(message, image, prep, *, n_out=2,
                                  stride=2, pad=1, kh=3, kw=3):
    """Mirrors CoordinatePredictorReceiver.forward(message, x, _aux_input)."""
    b, c, h, w = image.shape
    ho = (h + 2 * pad - kh) // stride + 1
    wo = (w + 2 * pad - kw) // stride + 1
    hw = ho * wo
    k = c * kh * kw
    k_pad = prep["wc"].shape[0]
    c_enc = prep["wc"].shape[1]
    emb = prep["rm"].shape[2]
    msg_dim = message.shape[1]
    cls = prep["w2"].shape[0]
    out_pad = prep["w3"].shape[1]

    # --- im2col glue (plain JAX; per-batch (hw, K_pad) patch matrices) ---
    # TODO(synk): move im2col in-kernel (strided-tap DMA) once H/W grow.
    xp = jnp.pad(image, ((0, 0), (0, 0), (pad, pad), (pad, pad)))
    taps = []
    for i in range(kh):
        for j in range(kw):
            taps.append(xp[:, :, i:i + stride * ho:stride, j:j + stride * wo:stride])
    p = jnp.stack(taps, axis=0).reshape(kh, kw, b, c, ho, wo)
    p = jnp.transpose(p, (2, 4, 5, 3, 0, 1))           # (B, Ho, Wo, C, KH, KW)
    patches = p.reshape(b, hw, k)
    patches = jnp.pad(patches, ((0, 0), (0, 0), (0, k_pad - k)))   # (B, hw, K_pad)

    msg3 = message[:, None, :]                         # (B, 1, MSG)

    args = (patches, prep["wc"], prep["bc"], prep["rm"], prep["bred"], msg3,
            prep["w1i"], prep["w1m"], prep["b1"], prep["w2"], prep["b2"],
            prep["w3"], prep["b3"])

    def _const(shape):
        n = len(shape)
        return pl.BlockSpec(shape, lambda i: (0,) * n)

    in_specs = [
        pl.BlockSpec((None, hw, k_pad), lambda i: (i, 0, 0)),      # per-batch patches
        _const(prep["wc"].shape), _const(prep["bc"].shape),
        _const(prep["rm"].shape), _const(prep["bred"].shape),
        pl.BlockSpec((None, 1, msg_dim), lambda i: (i, 0, 0)),     # per-batch message
        _const(prep["w1i"].shape), _const(prep["w1m"].shape), _const(prep["b1"].shape),
        _const(prep["w2"].shape), _const(prep["b2"].shape),
        _const(prep["w3"].shape), _const(prep["b3"].shape),
    ]
    out_specs = pl.BlockSpec((None, 1, out_pad), lambda i: (i, 0, 0))

    flops = 2 * b * (hw * k_pad * c_enc + c_enc * hw * emb
                     + emb * cls + msg_dim * cls + cls * cls + cls * out_pad)
    bytes_accessed = sum(int(a.size) * a.dtype.itemsize for a in args) + b * out_pad * 4

    out = pl.pallas_call(
        _fused_receiver_kernel,
        out_shape=jax.ShapeDtypeStruct((b, 1, out_pad), jnp.float32),
        grid=(b,),
        in_specs=in_specs,
        out_specs=out_specs,
        compiler_params=pltpu.CompilerParams(
            dimension_semantics=("parallel",),
            vmem_limit_bytes=32 * 1024 * 1024),
        cost_estimate=pl.CostEstimate(flops=flops, transcendentals=0,
                                      bytes_accessed=bytes_accessed),
    )(*args)

    return out.reshape(b, out_pad)[:, :n_out]


# ------------------------------------ pure-JAX ref --------------------------------

def reference(message, image, params):
    y = jax.lax.conv_general_dilated(
        image, params["enc_w"], window_strides=(2, 2), padding=((1, 1), (1, 1)),
        dimension_numbers=("NCHW", "OIHW", "NCHW"))
    y = jnp.maximum(y + params["enc_b"].reshape(1, -1, 1, 1), 0.0)
    flat = y.reshape(y.shape[0], -1)                                # nn.Flatten (NCHW)
    reduced = flat @ params["red_w"].T + params["red_b"]
    cat = jnp.concatenate([reduced, message], axis=1)               # torch.cat dim=1
    h = jnp.maximum(cat @ params["cls_w1"].T + params["cls_b1"], 0.0)
    h = jnp.maximum(h @ params["cls_w2"].T + params["cls_b2"], 0.0)
    return h @ params["cls_w3"].T + params["cls_b3"]


# --------------------------------------- main -------------------------------------

if __name__ == "__main__":
    key = jax.random.PRNGKey(0)
    B, C, H, W = 2, 3, 16, 16
    C_ENC = 8            # encoder output channels
    EMB = 32             # receiver_image_embedding
    MSG = 16             # message embedding width
    CLS = 64             # coordinate-classifier hidden width
    KH = KW = 3
    HO = WO = H // 2
    FLAT = C_ENC * HO * WO

    ks = jax.random.split(key, 12)
    image = jax.random.normal(ks[0], (B, C, H, W), jnp.float32)
    message = jax.random.normal(ks[1], (B, MSG), jnp.float32)

    params = {
        "enc_w": 0.1 * jax.random.normal(ks[2], (C_ENC, C, KH, KW), jnp.float32),
        "enc_b": 0.1 * jax.random.normal(ks[3], (C_ENC,), jnp.float32),
        "red_w": 0.05 * jax.random.normal(ks[4], (EMB, FLAT), jnp.float32),
        "red_b": 0.05 * jax.random.normal(ks[5], (EMB,), jnp.float32),
        "cls_w1": 0.05 * jax.random.normal(ks[6], (CLS, EMB + MSG), jnp.float32),
        "cls_b1": 0.05 * jax.random.normal(ks[7], (CLS,), jnp.float32),
        "cls_w2": 0.05 * jax.random.normal(ks[8], (CLS, CLS), jnp.float32),
        "cls_b2": 0.05 * jax.random.normal(ks[9], (CLS,), jnp.float32),
        "cls_w3": 0.05 * jax.random.normal(ks[10], (2, CLS), jnp.float32),
        "cls_b3": 0.05 * jax.random.normal(ks[11], (2,), jnp.float32),
    }

    prep = prepare_params(params, HO, WO)               # once, outside the hot path
    fwd = jax.jit(coordinate_predictor_receiver)

    out = jax.block_until_ready(fwd(message, image, prep))

    ref = reference(message, image, params)
    assert out.shape == (B, 2), out.shape
    err = float(jnp.max(jnp.abs(out - ref)))
    assert jnp.allclose(out, ref, atol=1e-4, rtol=1e-4), f"max abs err {err}"
    print("KERNEL_OK")
</pallas_src>

<mosaic_0001>
module attributes {stable_mosaic.version = 11 : i64} {
  func.func @_fused_receiver_kernel(%arg0: i32, %arg1: memref<1x64x32xf32, #tpu.memory_space<vmem>>, %arg2: memref<32x8xf32, #tpu.memory_space<vmem>>, %arg3: memref<1x8xf32, #tpu.memory_space<vmem>>, %arg4: memref<8x64x32xf32, #tpu.memory_space<vmem>>, %arg5: memref<1x32xf32, #tpu.memory_space<vmem>>, %arg6: memref<1x1x16xf32, #tpu.memory_space<vmem>>, %arg7: memref<32x64xf32, #tpu.memory_space<vmem>>, %arg8: memref<16x64xf32, #tpu.memory_space<vmem>>, %arg9: memref<1x64xf32, #tpu.memory_space<vmem>>, %arg10: memref<64x64xf32, #tpu.memory_space<vmem>>, %arg11: memref<1x64xf32, #tpu.memory_space<vmem>>, %arg12: memref<64x128xf32, #tpu.memory_space<vmem>>, %arg13: memref<1x128xf32, #tpu.memory_space<vmem>>, %arg14: memref<1x1x128xf32, #tpu.memory_space<vmem>>) attributes {dimension_semantics = [#tpu.dimension_semantics<parallel>], iteration_bounds = array<i64: 2>, scalar_prefetch = 0 : i64, scratch_operands = 0 : i64, tpu.core_type = #tpu.core_type<tc>, window_params = [{transform_indices = @transform_0, window_bounds = array<i64: 1, 64, 32>}, {pipeline_mode = #tpu.pipeline_mode<synchronous>, transform_indices = @transform_1, window_bounds = array<i64: 32, 8>}, {pipeline_mode = #tpu.pipeline_mode<synchronous>, transform_indices = @transform_2, window_bounds = array<i64: 1, 8>}, {pipeline_mode = #tpu.pipeline_mode<synchronous>, transform_indices = @transform_3, window_bounds = array<i64: 8, 64, 32>}, {pipeline_mode = #tpu.pipeline_mode<synchronous>, transform_indices = @transform_4, window_bounds = array<i64: 1, 32>}, {transform_indices = @transform_5, window_bounds = array<i64: 1, 1, 16>}, {pipeline_mode = #tpu.pipeline_mode<synchronous>, transform_indices = @transform_6, window_bounds = array<i64: 32, 64>}, {pipeline_mode = #tpu.pipeline_mode<synchronous>, transform_indices = @transform_7, window_bounds = array<i64: 16, 64>}, {pipeline_mode = #tpu.pipeline_mode<synchronous>, transform_indices = @transform_8, window_bounds = array<i64: 1, 64>}, {pipeline_mode = #tpu.pipeline_mode<synchronous>, transform_indices = @transform_9, window_bounds = array<i64: 64, 64>}, {pipeline_mode = #tpu.pipeline_mode<synchronous>, transform_indices = @transform_10, window_bounds = array<i64: 1, 64>}, {pipeline_mode = #tpu.pipeline_mode<synchronous>, transform_indices = @transform_11, window_bounds = array<i64: 64, 128>}, {pipeline_mode = #tpu.pipeline_mode<synchronous>, transform_indices = @transform_12, window_bounds = array<i64: 1, 128>}, {transform_indices = @transform_13, window_bounds = array<i64: 1, 1, 128>}]} {
    %c0 = arith.constant 0 : index
    %c0_0 = arith.constant 0 : index
    %c0_1 = arith.constant 0 : index
    %0 = vector.load %arg1[%c0, %c0_0, %c0_1] : memref<1x64x32xf32, #tpu.memory_space<vmem>>, vector<1x64x32xf32>
    %1 = vector.shape_cast %0 : vector<1x64x32xf32> to vector<64x32xf32>
    %c0_2 = arith.constant 0 : index
    %c0_3 = arith.constant 0 : index
    %2 = vector.load %arg2[%c0_2, %c0_3] : memref<32x8xf32, #tpu.memory_space<vmem>>, vector<32x8xf32>
    %cst = arith.constant dense<0.000000e+00> : vector<64x8xf32>
    %3 = tpu.matmul %1, %2, %cst {dimension_numbers = #tpu.dot_dimension_numbers<[1], [0], [0], [1], [0, 0, 1, 1], [], []>} : vector<64x32xf32>, vector<32x8xf32>, vector<64x8xf32> -> vector<64x8xf32>
    %c0_4 = arith.constant 0 : index
    %c0_5 = arith.constant 0 : index
    %4 = vector.load %arg3[%c0_4, %c0_5] : memref<1x8xf32, #tpu.memory_space<vmem>>, vector<1x8xf32>
    %5 = vector.broadcast %4 : vector<1x8xf32> to vector<64x8xf32>
    %6 = arith.addf %3, %5 : vector<64x8xf32>
    %cst_6 = arith.constant 0.000000e+00 : f32
    %7 = vector.broadcast %cst_6 : f32 to vector<64x8xf32>
    %8 = arith.maximumf %6, %7 : vector<64x8xf32>
    %9 = vector.extract_strided_slice %8 {offsets = [0, 0], sizes = [64, 1], strides = [1, 1]} : vector<64x8xf32> to vector<64x1xf32>
    %c0_7 = arith.constant 0 : index
    %c0_8 = arith.constant 0 : index
    %c0_9 = arith.constant 0 : index
    %10 = vector.load %arg4[%c0_7, %c0_8, %c0_9] : memref<8x64x32xf32, #tpu.memory_space<vmem>>, vector<1x64x32xf32>
    %11 = vector.shape_cast %10 : vector<1x64x32xf32> to vector<64x32xf32>
    %12 = vector.broadcast %9 : vector<64x1xf32> to vector<64x32xf32>
    %13 = arith.mulf %12, %11 : vector<64x32xf32>
    %14 = vector.extract_strided_slice %8 {offsets = [0, 1], sizes = [64, 1], strides = [1, 1]} : vector<64x8xf32> to vector<64x1xf32>
    %c1 = arith.constant 1 : index
    %c0_10 = arith.constant 0 : index
    %c0_11 = arith.constant 0 : index
    %15 = vector.load %arg4[%c1, %c0_10, %c0_11] : memref<8x64x32xf32, #tpu.memory_space<vmem>>, vector<1x64x32xf32>
    %16 = vector.shape_cast %15 : vector<1x64x32xf32> to vector<64x32xf32>
    %17 = vector.broadcast %14 : vector<64x1xf32> to vector<64x32xf32>
    %18 = arith.mulf %17, %16 : vector<64x32xf32>
    %19 = arith.addf %13, %18 : vector<64x32xf32>
    %20 = vector.extract_strided_slice %8 {offsets = [0, 2], sizes = [64, 1], strides = [1, 1]} : vector<64x8xf32> to vector<64x1xf32>
    %c2 = arith.constant 2 : index
    %c0_12 = arith.constant 0 : index
    %c0_13 = arith.constant 0 : index
    %21 = vector.load %arg4[%c2, %c0_12, %c0_13] : memref<8x64x32xf32, #tpu.memory_space<vmem>>, vector<1x64x32xf32>
    %22 = vector.shape_cast %21 : vector<1x64x32xf32> to vector<64x32xf32>
    %23 = vector.broadcast %20 : vector<64x1xf32> to vector<64x32xf32>
    %24 = arith.mulf %23, %22 : vector<64x32xf32>
    %25 = arith.addf %19, %24 : vector<64x32xf32>
    %26 = vector.extract_strided_slice %8 {offsets = [0, 3], sizes = [64, 1], strides = [1, 1]} : vector<64x8xf32> to vector<64x1xf32>
    %c3 = arith.constant 3 : index
    %c0_14 = arith.constant 0 : index
    %c0_15 = arith.constant 0 : index
    %27 = vector.load %arg4[%c3, %c0_14, %c0_15] : memref<8x64x32xf32, #tpu.memory_space<vmem>>, vector<1x64x32xf32>
    %28 = vector.shape_cast %27 : vector<1x64x32xf32> to vector<64x32xf32>
    %29 = vector.broadcast %26 : vector<64x1xf32> to vector<64x32xf32>
    %30 = arith.mulf %29, %28 : vector<64x32xf32>
    %31 = arith.addf %25, %30 : vector<64x32xf32>
    %32 = vector.extract_strided_slice %8 {offsets = [0, 4], sizes = [64, 1], strides = [1, 1]} : vector<64x8xf32> to vector<64x1xf32>
    %c4 = arith.constant 4 : index
    %c0_16 = arith.constant 0 : index
    %c0_17 = arith.constant 0 : index
    %33 = vector.load %arg4[%c4, %c0_16, %c0_17] : memref<8x64x32xf32, #tpu.memory_space<vmem>>, vector<1x64x32xf32>
    %34 = vector.shape_cast %33 : vector<1x64x32xf32> to vector<64x32xf32>
    %35 = vector.broadcast %32 : vector<64x1xf32> to vector<64x32xf32>
    %36 = arith.mulf %35, %34 : vector<64x32xf32>
    %37 = arith.addf %31, %36 : vector<64x32xf32>
    %38 = vector.extract_strided_slice %8 {offsets = [0, 5], sizes = [64, 1], strides = [1, 1]} : vector<64x8xf32> to vector<64x1xf32>
    %c5 = arith.constant 5 : index
    %c0_18 = arith.constant 0 : index
    %c0_19 = arith.constant 0 : index
    %39 = vector.load %arg4[%c5, %c0_18, %c0_19] : memref<8x64x32xf32, #tpu.memory_space<vmem>>, vector<1x64x32xf32>
    %40 = vector.shape_cast %39 : vector<1x64x32xf32> to vector<64x32xf32>
    %41 = vector.broadcast %38 : vector<64x1xf32> to vector<64x32xf32>
    %42 = arith.mulf %41, %40 : vector<64x32xf32>
    %43 = arith.addf %37, %42 : vector<64x32xf32>
    %44 = vector.extract_strided_slice %8 {offsets = [0, 6], sizes = [64, 1], strides = [1, 1]} : vector<64x8xf32> to vector<64x1xf32>
    %c6 = arith.constant 6 : index
    %c0_20 = arith.constant 0 : index
    %c0_21 = arith.constant 0 : index
    %45 = vector.load %arg4[%c6, %c0_20, %c0_21] : memref<8x64x32xf32, #tpu.memory_space<vmem>>, vector<1x64x32xf32>
    %46 = vector.shape_cast %45 : vector<1x64x32xf32> to vector<64x32xf32>
    %47 = vector.broadcast %44 : vector<64x1xf32> to vector<64x32xf32>
    %48 = arith.mulf %47, %46 : vector<64x32xf32>
    %49 = arith.addf %43, %48 : vector<64x32xf32>
    %50 = vector.extract_strided_slice %8 {offsets = [0, 7], sizes = [64, 1], strides = [1, 1]} : vector<64x8xf32> to vector<64x1xf32>
    %c7 = arith.constant 7 : index
    %c0_22 = arith.constant 0 : index
    %c0_23 = arith.constant 0 : index
    %51 = vector.load %arg4[%c7, %c0_22, %c0_23] : memref<8x64x32xf32, #tpu.memory_space<vmem>>, vector<1x64x32xf32>
    %52 = vector.shape_cast %51 : vector<1x64x32xf32> to vector<64x32xf32>
    %53 = vector.broadcast %50 : vector<64x1xf32> to vector<64x32xf32>
    %54 = arith.mulf %53, %52 : vector<64x32xf32>
    %55 = arith.addf %49, %54 : vector<64x32xf32>
    %cst_24 = arith.constant dense<0.000000e+00> : vector<32xf32>
    %56 = vector.multi_reduction <add>, %55, %cst_24 [0] : vector<64x32xf32> to vector<32xf32>
    %57 = vector.shape_cast %56 : vector<32xf32> to vector<1x32xf32>
    %c0_25 = arith.constant 0 : index
    %c0_26 = arith.constant 0 : index
    %58 = vector.load %arg5[%c0_25, %c0_26] : memref<1x32xf32, #tpu.memory_space<vmem>>, vector<1x32xf32>
    %59 = arith.addf %57, %58 : vector<1x32xf32>
    %c0_27 = arith.constant 0 : index
    %c0_28 = arith.constant 0 : index
    %60 = vector.load %arg7[%c0_27, %c0_28] : memref<32x64xf32, #tpu.memory_space<vmem>>, vector<32x64xf32>
    %cst_29 = arith.constant dense<0.000000e+00> : vector<1x64xf32>
    %61 = tpu.matmul %59, %60, %cst_29 {dimension_numbers = #tpu.dot_dimension_numbers<[1], [0], [0], [1], [0, 0, 1, 1], [], []>} : vector<1x32xf32>, vector<32x64xf32>, vector<1x64xf32> -> vector<1x64xf32>
    %c0_30 = arith.constant 0 : index
    %c0_31 = arith.constant 0 : index
    %c0_32 = arith.constant 0 : index
    %62 = vector.load %arg6[%c0_30, %c0_31, %c0_32] : memref<1x1x16xf32, #tpu.memory_space<vmem>>, vector<1x1x16xf32>
    %63 = vector.shape_cast %62 : vector<1x1x16xf32> to vector<1x16xf32>
    %c0_33 = arith.constant 0 : index
    %c0_34 = arith.constant 0 : index
    %64 = vector.load %arg8[%c0_33, %c0_34] : memref<16x64xf32, #tpu.memory_space<vmem>>, vector<16x64xf32>
    %cst_35 = arith.constant dense<0.000000e+00> : vector<1x64xf32>
    %65 = tpu.matmul %63, %64, %cst_35 {dimension_numbers = #tpu.dot_dimension_numbers<[1], [0], [0], [1], [0, 0, 1, 1], [], []>} : vector<1x16xf32>, vector<16x64xf32>, vector<1x64xf32> -> vector<1x64xf32>
    %66 = arith.addf %61, %65 : vector<1x64xf32>
    %c0_36 = arith.constant 0 : index
    %c0_37 = arith.constant 0 : index
    %67 = vector.load %arg9[%c0_36, %c0_37] : memref<1x64xf32, #tpu.memory_space<vmem>>, vector<1x64xf32>
    %68 = arith.addf %66, %67 : vector<1x64xf32>
    %cst_38 = arith.constant 0.000000e+00 : f32
    %69 = vector.broadcast %cst_38 : f32 to vector<1x64xf32>
    %70 = arith.maximumf %68, %69 : vector<1x64xf32>
    %c0_39 = arith.constant 0 : index
    %c0_40 = arith.constant 0 : index
    %71 = vector.load %arg10[%c0_39, %c0_40] : memref<64x64xf32, #tpu.memory_space<vmem>>, vector<64x64xf32>
    %cst_41 = arith.constant dense<0.000000e+00> : vector<1x64xf32>
    %72 = tpu.matmul %70, %71, %cst_41 {dimension_numbers = #tpu.dot_dimension_numbers<[1], [0], [0], [1], [0, 0, 1, 1], [], []>} : vector<1x64xf32>, vector<64x64xf32>, vector<1x64xf32> -> vector<1x64xf32>
    %c0_42 = arith.constant 0 : index
    %c0_43 = arith.constant 0 : index
    %73 = vector.load %arg11[%c0_42, %c0_43] : memref<1x64xf32, #tpu.memory_space<vmem>>, vector<1x64xf32>
    %74 = arith.addf %72, %73 : vector<1x64xf32>
    %cst_44 = arith.constant 0.000000e+00 : f32
    %75 = vector.broadcast %cst_44 : f32 to vector<1x64xf32>
    %76 = arith.maximumf %74, %75 : vector<1x64xf32>
    %c0_45 = arith.constant 0 : index
    %c0_46 = arith.constant 0 : index
    %77 = vector.load %arg12[%c0_45, %c0_46] : memref<64x128xf32, #tpu.memory_space<vmem>>, vector<64x128xf32>
    %cst_47 = arith.constant dense<0.000000e+00> : vector<1x128xf32>
    %78 = tpu.matmul %76, %77, %cst_47 {dimension_numbers = #tpu.dot_dimension_numbers<[1], [0], [0], [1], [0, 0, 1, 1], [], []>} : vector<1x64xf32>, vector<64x128xf32>, vector<1x128xf32> -> vector<1x128xf32>
    %c0_48 = arith.constant 0 : index
    %c0_49 = arith.constant 0 : index
    %79 = vector.load %arg13[%c0_48, %c0_49] : memref<1x128xf32, #tpu.memory_space<vmem>>, vector<1x128xf32>
    %80 = arith.addf %78, %79 : vector<1x128xf32>
    %c0_50 = arith.constant 0 : index
    %c0_51 = arith.constant 0 : index
    %c0_52 = arith.constant 0 : index
    %81 = vector.load %arg14[%c0_50, %c0_51, %c0_52] : memref<1x1x128xf32, #tpu.memory_space<vmem>>, vector<1x1x128xf32>
    %82 = vector.shape_cast %81 : vector<1x1x128xf32> to vector<1x128xf32>
    %83 = vector.shape_cast %80 : vector<1x128xf32> to vector<1x1x128xf32>
    tpu.vector_store %arg14[%c0_50, %c0_51, %c0_52], %83 {strides = array<i32>} : memref<1x1x128xf32, #tpu.memory_space<vmem>>, vector<1x1x128xf32>,
    return
  }
  func.func @transform_0(%arg0: i32) -> (i32, i32, i32) {
    %c0_i32 = arith.constant 0 : i32
    %c0_i32_0 = arith.constant 0 : i32
    %c0_i32_1 = arith.constant 0 : i32
    return %arg0, %c0_i32, %c0_i32_0 : i32, i32, i32
  }
  func.func @transform_1(%arg0: i32) -> (i32, i32) {
    %c0_i32 = arith.constant 0 : i32
    %c0_i32_0 = arith.constant 0 : i32
    %c0_i32_1 = arith.constant 0 : i32
    return %c0_i32, %c0_i32_0 : i32, i32
  }
  func.func @transform_2(%arg0: i32) -> (i32, i32) {
    %c0_i32 = arith.constant 0 : i32
    %c0_i32_0 = arith.constant 0 : i32
    %c0_i32_1 = arith.constant 0 : i32
    return %c0_i32, %c0_i32_0 : i32, i32
  }
  func.func @transform_3(%arg0: i32) -> (i32, i32, i32) {
    %c0_i32 = arith.constant 0 : i32
    %c0_i32_0 = arith.constant 0 : i32
    %c0_i32_1 = arith.constant 0 : i32
    %c0_i32_2 = arith.constant 0 : i32
    return %c0_i32, %c0_i32_0, %c0_i32_1 : i32, i32, i32
  }
  func.func @transform_4(%arg0: i32) -> (i32, i32) {
    %c0_i32 = arith.constant 0 : i32
    %c0_i32_0 = arith.constant 0 : i32
    %c0_i32_1 = arith.constant 0 : i32
    return %c0_i32, %c0_i32_0 : i32, i32
  }
  func.func @transform_5(%arg0: i32) -> (i32, i32, i32) {
    %c0_i32 = arith.constant 0 : i32
    %c0_i32_0 = arith.constant 0 : i32
    %c0_i32_1 = arith.constant 0 : i32
    return %arg0, %c0_i32, %c0_i32_0 : i32, i32, i32
  }
  func.func @transform_6(%arg0: i32) -> (i32, i32) {
    %c0_i32 = arith.constant 0 : i32
    %c0_i32_0 = arith.constant 0 : i32
    %c0_i32_1 = arith.constant 0 : i32
    return %c0_i32, %c0_i32_0 : i32, i32
  }
  func.func @transform_7(%arg0: i32) -> (i32, i32) {
    %c0_i32 = arith.constant 0 : i32
    %c0_i32_0 = arith.constant 0 : i32
    %c0_i32_1 = arith.constant 0 : i32
    return %c0_i32, %c0_i32_0 : i32, i32
  }
  func.func @transform_8(%arg0: i32) -> (i32, i32) {
    %c0_i32 = arith.constant 0 : i32
    %c0_i32_0 = arith.constant 0 : i32
    %c0_i32_1 = arith.constant 0 : i32
    return %c0_i32, %c0_i32_0 : i32, i32
  }
  func.func @transform_9(%arg0: i32) -> (i32, i32) {
    %c0_i32 = arith.constant 0 : i32
    %c0_i32_0 = arith.constant 0 : i32
    %c0_i32_1 = arith.constant 0 : i32
    return %c0_i32, %c0_i32_0 : i32, i32
  }
  func.func @transform_10(%arg0: i32) -> (i32, i32) {
    %c0_i32 = arith.constant 0 : i32
    %c0_i32_0 = arith.constant 0 : i32
    %c0_i32_1 = arith.constant 0 : i32
    return %c0_i32, %c0_i32_0 : i32, i32
  }
  func.func @transform_11(%arg0: i32) -> (i32, i32) {
    %c0_i32 = arith.constant 0 : i32
    %c0_i32_0 = arith.constant 0 : i32
    %c0_i32_1 = arith.constant 0 : i32
    return %c0_i32, %c0_i32_0 : i32, i32
  }
  func.func @transform_12(%arg0: i32) -> (i32, i32) {
    %c0_i32 = arith.constant 0 : i32
    %c0_i32_0 = arith.constant 0 : i32
    %c0_i32_1 = arith.constant 0 : i32
    return %c0_i32, %c0_i32_0 : i32, i32
  }
  func.func @transform_13(%arg0: i32) -> (i32, i32, i32) {
    %c0_i32 = arith.constant 0 : i32
    %c0_i32_0 = arith.constant 0 : i32
    %c0_i32_1 = arith.constant 0 : i32
    return %arg0, %c0_i32, %c0_i32_0 : i32, i32, i32
  }
}

</mosaic_0001>

<bundles_post_ra>
// kernel: coordinate_predictor_receiver.1
= control target key start
LH: loop header
LB: loop body
LE: loop exit
PB: predicated region body
PF: predicated region fallthrough
CT: control target
= control target key end

     0   :  { %s2101_s0 = inlined_call_operand.vmem [shape: f32[2,64,32], index: 0, kind: input, shape index: {}]   ;;  %s2102_s1 = inlined_call_operand.vmem [shape: f32[32,8], index: 1, kind: input, shape index: {}]   ;;  %s2103_s2 = inlined_call_operand.vmem [shape: f32[1,8], index: 2, kind: input, shape index: {}]   ;;  %s2104_s3 = inlined_call_operand.vmem [shape: f32[8,64,32], index: 3, kind: input, shape index: {}]   ;;  %s2105_s4 = inlined_call_operand.vmem [shape: f32[1,32], index: 4, kind: input, shape index: {}]   ;;  %s2106_s5 = inlined_call_operand.vmem [shape: f32[2,1,16], index: 5, kind: input, shape index: {}]   ;;  %s2107_s6 = inlined_call_operand.vmem [shape: f32[32,64], index: 6, kind: input, shape index: {}]   ;;  %s2108_s7 = inlined_call_operand.vmem [shape: f32[16,64], index: 7, kind: input, shape index: {}]   ;;  %s2109_s8 = inlined_call_operand.vmem [shape: f32[1,64], index: 8, kind: input, shape index: {}]   ;;  %s2110_s9 = inlined_call_operand.vmem [shape: f32[64,64], index: 9, kind: input, shape index: {}]   ;;  %s2111_s10 = inlined_call_operand.vmem [shape: f32[1,64], index: 10, kind: input, shape index: {}]   ;;  %s2112_s11 = inlined_call_operand.vmem [shape: f32[64,128], index: 11, kind: input, shape index: {}]   ;;  %s2113_s12 = inlined_call_operand.vmem [shape: f32[1,128], index: 12, kind: input, shape index: {}]   ;;  %s2114_s13 = inlined_call_operand.hbm [shape: f32[2,1,128], index: 13, kind: output, shape index: {}]  }
   0x1   :  { %2115 = sst [smem:[#allocation6_spill]] %s2101_s0 }
   0x2   :  { %2116 = sst [smem:[#allocation7_spill]] %s2102_s1 }
   0x3   :  { %2117 = sst [smem:[#allocation8_spill]] %s2103_s2 }
   0x4   :  { %18 = vsyncpa [#allocation3], 0 }
   0x5   :  { %20 = vsyncpa [#allocation3 + $0x1], 0  ;;  %s1550_s25 = smov 0   ;;  %s1552_s26 = smov 0  }
   0x6   :  { %s1554_s27 = smov 0   ;;  %s1556_s28 = smov 0  }
   0x7 LB: > { %s1571_s29 = sadd.s32 4294967295, %s1470_s28   ;;  %s1221_s30 = sadd.s32 4294967294, %s1470_s28   ;;  %s1470_s28 = sphi %s1556_s28, %s2128_s28   ;;  %s1466_s27 = sphi %s1554_s27, %s2127_s27   ;;  %s1462_s26 = sphi %s1552_s26, %s2126_s26   ;;  %s1458_s25 = sphi %s1550_s25, %s2125_s25  }
   0x8   : > { %s1575_s14 = sadd.s32 1, %s1470_s28   ;;  %s316_s15 = sadd.s32 1, %s1466_s27 }
   0x9   : > { %s313_s16 = ssub.s32 %s1470_s28, %s1575_s14  ;;  %p326_p0 = scmp.ne.s32.totalorder %s1466_s27, %s1462_s26 }
   0xa   : > { %p314_p1 = scmp.eq.s32.totalorder %s313_s16, 0  ;;  %p327_p2 = scmp.eq.s32.totalorder %s1571_s29, 1 }
   0xb   : > { %p332_p3 = scmp.ne.s32.totalorder %s1462_s26, %s1458_s25  ;;  %p333_p4 = scmp.eq.s32.totalorder %s1221_s30, 1 }
   0xc   : > { %s1586_s17 = scalar_select %p314_p1, %s1466_s27, %s316_s15  }
   0xd   : > { %p1588_p5 = por %p327_p2, %p326_p0  ;;  %p1592_p6 = por %p333_p4, %p332_p3 }
   0xe   : > { %2118 = sst [smem:[#allocation5_spill]] %s1586_s17  ;;  %p1224_p7 = scmp.ge.s32.totalorder %s1470_s28, 1 }
   0xf   : > { %p398_p8 = scmp.lt.s32.totalorder %s1470_s28, 3 }
  0x11   : > { %p399_p9 = pnand %p1224_p7, %p398_p8 }
  0x12   : > { %s2121_s1 = sld [smem:[#allocation7_spill]] (!%p399_p9)  ;;  %p444_p10 = scmp.lt.s32.totalorder (!%p399_p9), %s1571_s29, 1 }
  0x13   : > { %402 = sbr.rel (%p399_p9) target bundleno = 916 (0x394), region = 72  ;;  %s2122_s0 = sld [smem:[#allocation6_spill]] (!%p399_p9) }
  0x14   : > { %s2123_s2 = sld [smem:[#allocation8_spill]] (!%p399_p9)  ;;  %s1153_s23 = scalar_lea.hbm (!%p399_p9), %s2114_s13, %s1571_s29 }
  0x15   : > { %s1157_s16 = sshll.u32 (!%p399_p9), %s1153_s23, 4  ;;  %s1428_s22 = scalar_lea.hbm (!%p399_p9), %s2114_s13, 2  ;;  %s1158_s16 = int_to_ptr.hbm [resolvable:$true] %s1157_s16 }
  0x18   : > { %v463_v0 = vld [vmem:[%s2121_s1 + $0x18] sm:$0xff]  ;;  %v462_v1 = vld [vmem:[%s2121_s1 + $0x10] sm:$0xff]  ;;  %v461_v2 = vld [vmem:[%s2121_s1 + $0x8] sm:$0xff]  ;;  %s1609_s15 = scalar_select %p444_p10, %s1571_s29, 1  ;;  %vm468_vm0 = vcmask 261120   ;;  %v1472_v12 = vmov 7  }
  0x19   : > { %505 = vmatpush.msra.mxu0 %v463_v0  ;;  %1298 = vmatpush.msra.mxu2 %v463_v0  ;;  %v460_v3 = vld [vmem:[%s2121_s1] sm:$0xff]  ;;  %v1473_v13 = vmov 1   ;;  %v1474_v14 = vmov 0   ;;  %v1475_v22 = vmov 4   ;;  %v1476_v23 = vmov 2  }
  0x1a   : > { %1299 = vmatpush.msra.mxu3 %v463_v0  ;;  %s1297_s21 = sshll.u32 %s1609_s15, 6  ;;  %1360 = vset.pattern.permute.xlu2 %v1472_v12  ;;  %v1632_v15 = vld [vmem:[%s2123_s2] ss:$0 sm:$0xff]  ;;  %v1477_v25 = vmov 6   ;;  %v1478_v26 = vmov 3   ;;  %v1479_v29 = vmov 5  }
  0x1b   : > { %506 = vmatpush.msra.mxu0 %v462_v1  ;;  %1300 = vmatpush.msra.mxu2 %v462_v1  ;;  %s448_s17 = scalar_lea.vmem %s2122_s0, %s1297_s21  ;;  %v1235_v48 = vld [vmem:[%s2104_s3 + $0x40] sm:$0xff]  ;;  %vm1027_vm1 = vcmask 130048   ;;  %vm1086_vm2 = vcmask 523264   ;;  %s442_s0 = sand.u32 1, %s1462_s26  }
  0x1c   : > { %1301 = vmatpush.msra.mxu3 %v462_v1  ;;  %v452_v4 = vld [vmem:[%s448_s17] sm:$0xff]  ;;  %v457_v6 = vld [vmem:[%s448_s17 + $0x28] sm:$0xff]  ;;  %v458_v8 = vld [vmem:[%s448_s17 + $0x30] sm:$0xff]  ;;  %1354 = vset.pattern.permute.xlu1 %v1473_v13  ;;  %s443_s2 = scalar_lea.vmem [#allocation2], %s442_s0  ;;  %s1145_s20 = scalar_lea.sflag [#allocation3], %s442_s0 }
  0x1d   : > { %507 = vmatpush.msra.mxu0 %v461_v2  ;;  %1302 = vmatpush.msra.mxu2 %v461_v2  ;;  %v456_v5 = vld [vmem:[%s448_s17 + $0x20] sm:$0xff]  ;;  %v453_v7 = vld [vmem:[%s448_s17 + $0x8] sm:$0xff]  ;;  %v454_v9 = vld [vmem:[%s448_s17 + $0x10] sm:$0xff]  ;;  %s1155_s30 = sshll.u32 %s443_s2, 4  ;;  %s1422_s21 = sshra.s32 %s1158_s16, 4  ;;  %s1156_s30 = int_to_ptr.vmem [resolvable:$true] %s1155_s30  ;;  %s1423_s21 = int_to_ptr.hbm [resolvable:$true] %s1422_s21 }
  0x1e   : > { %1303 = vmatpush.msra.mxu3 %v461_v2  ;;  %v459_v10 = vld [vmem:[%s448_s17 + $0x38] sm:$0xff]  ;;  %1353 = vset.pattern.permute.xlu0 %v1474_v14  ;;  %v542_v49 = vld [vmem:[%s2104_s3] sm:$0xff]  ;;  %p1429_p0 = scmp.lt.s32.totalorder %s1423_s21, %s2114_s13 }
  0x1f   : > { %508 = vmatpush.msra.mxu0 %v460_v3  ;;  %1304 = vmatpush.msra.mxu2 %v460_v3  ;;  %v455_v11 = vld [vmem:[%s448_s17 + $0x18] sm:$0xff]  ;;  %v1243_v56 = vld [vmem:[%s2104_s3 + $0x80] sm:$0xff]  ;;  %s451_s17 = scalar_lea.vmem %s2106_s5, %s1609_s15 }
  0x20   : > { %1227 = vmatmul.msk.f32.vlgmr.msra.gmra.mxu0 %vm468_vm0, %v452_v4  ;;  %1231 = vmatmul.msk.f32.vlgmr.msra.gmra.mxu2 %vm468_vm0, %v456_v5  ;;  %v1251_v62 = vld [vmem:[%s2104_s3 + $0xc0] sm:$0xff] }
  0x21   : > { %1305 = vmatpush.msra.mxu3 %v460_v3  ;;  %v1259_v0 = vld [vmem:[%s2104_s3 + $0x100] sm:$0xff] }
  0x22   : > { %1232 = vmatmul.msk.f32.vlgmr.msra.gmra.mxu3 %vm468_vm0, %v457_v6 }
  0x28   : > { %1228 = vmatmul.msk.f32.gmra.mxu0 %vm468_vm0, %v453_v7  ;;  %v546_v7 = vld [vmem:[%s2104_s3 + $0x20] sm:$0xff] }
  0x2a   : > { %1233 = vmatmul.msk.f32.gmra.mxu3 %vm468_vm0, %v458_v8  ;;  %v1239_v8 = vld [vmem:[%s2104_s3 + $0x60] sm:$0xff] }
  0x30   : > { %1229 = vmatmul.msk.f32.gmra.mxu0 %vm468_vm0, %v454_v9  ;;  %v1267_v9 = vld [vmem:[%s2104_s3 + $0x140] sm:$0xff] }
  0x32   : > { %1234 = vmatmul.msk.f32.gmra.mxu3 %vm468_vm0, %v459_v10  ;;  %v1247_v10 = vld [vmem:[%s2104_s3 + $0xa0] sm:$0xff] }
  0x38   : > { %1230 = vmatmul.msk.f32.gmra.mxu0 %vm468_vm0, %v455_v11 }
  0x9d   : > { %v510_v16 = vpop.f32.mrf.mxu0 }
  0x9e   : > { %v511_v17 = vadd.f32 %v1632_v15, %v510_v16 }
  0xa0   : > { %v534_v18 = vmax.f32 %v511_v17, 0.0 }
  0xa2   : > { %950 = vperm.xlu2 %1360, %v534_v18   ;;  %608 = vperm.xlu1 %1354, %v534_v18  }
  0xa3   : > { %552 = vperm.xlu0 %1353, %v534_v18   ;;  %v522_v19 = vpop.f32.mrf.mxu2 }
  0xa4   : > { %v523_v20 = vadd.f32 %v1632_v15, %v522_v19 }
  0xa5   : > { %v525_v24 = vpop.f32.mrf.mxu3  ;;  %v513_v30 = vpop.f32.mrf.mxu0 }
  0xa6   : > { %v1636_v21 = vmax.f32 %v523_v20, 0.0  ;;  %v526_v27 = vadd.f32 %v1632_v15, %v525_v24  ;;  %v514_v31 = vadd.f32 %v1632_v15, %v513_v30  ;;  %v1283_v20 = vld [vmem:[%s2104_s3 + $0x1c0] sm:$0xff] }
  0xa8   : > { %v1647_v28 = vmax.f32 %v526_v27, 0.0  ;;  %v535_v32 = vmax.f32 %v514_v31, 0.0 }
  0xaa   : > { %1361 = vset.pattern.permute.xlu2 %v1474_v14  ;;  %1357 = vset.pattern.permute.xlu1 %v1475_v22 }
  0xab   : > { %1355 = vset.pattern.permute.xlu0 %v1476_v23  ;;  %572 = vperm.xlu2 %1361, %v1636_v21  }
  0xac   : > { %779 = vperm.xlu1 %1357, %v534_v18   ;;  %665 = vperm.xlu0 %1355, %v534_v18  }
  0xad   : > { %v528_v33 = vpop.f32.mrf.mxu3  ;;  %v516_v36 = vpop.f32.mrf.mxu0 }
  0xae   : > { %v529_v34 = vadd.f32 %v1632_v15, %v528_v33  ;;  %v517_v37 = vadd.f32 %v1632_v15, %v516_v36 }
  0xb0   : > { %v1670_v35 = vmax.f32 %v529_v34, 0.0  ;;  %v1677_v38 = vmax.f32 %v517_v37, 0.0  ;;  %v1240_v34 = vld [vmem:[%s2104_s3 + $0x68] sm:$0xff] }
  0xb3   : > { %1364 = vset.pattern.permute.xlu2 %v1476_v23 }
  0xb4   : > { %1359 = vset.pattern.permute.xlu1 %v1477_v25  ;;  %1356 = vset.pattern.permute.xlu0 %v1478_v26 }
  0xb5   : > { %681 = vperm.xlu2 %1364, %v1636_v21   ;;  %893 = vperm.xlu1 %1359, %v534_v18   ;;  %v531_v39 = vpop.f32.mrf.mxu3  ;;  %v519_v42 = vpop.f32.mrf.mxu0 }
  0xb6   : > { %722 = vperm.xlu0 %1356, %v534_v18   ;;  %v532_v40 = vadd.f32 %v1632_v15, %v531_v39  ;;  %v520_v44 = vadd.f32 %v1632_v15, %v519_v42  ;;  %v1275_v15 = vld [vmem:[%s2104_s3 + $0x180] sm:$0xff] }
  0xb8   : > { %v1683_v41 = vmax.f32 %v532_v40, 0.0  ;;  %v1698_v45 = vmax.f32 %v520_v44, 0.0  ;;  %v1248_v40 = vld [vmem:[%s2104_s3 + $0xa8] sm:$0xff] }
  0xbd   : > { %685 = vperm.xlu2 %1364, %v1647_v28   ;;  %1362 = vset.pattern.permute.xlu1 %v1473_v13 }
  0xbe   : > { %1358 = vset.pattern.permute.xlu0 %v1479_v29  ;;  %624 = vperm.xlu1 %1362, %v1636_v21  }
  0xbf   : > { %836 = vperm.xlu0 %1358, %v534_v18  }
  0xc5   : > { %1367 = vset.pattern.permute.xlu2 %v1475_v22 }
  0xc6   : > { %795 = vperm.xlu2 %1367, %v1636_v21   ;;  %628 = vperm.xlu1 %1362, %v1647_v28  }
  0xc7   : > { %1363 = vset.pattern.permute.xlu0 %v1474_v14 }
  0xc8   : > { %577 = vperm.xlu0 %1363, %v1647_v28  }
  0xce   : > { %1369 = vset.pattern.permute.xlu2 %v1479_v29  ;;  %1366 = vset.pattern.permute.xlu1 %v1478_v26 }
  0xcf   : > { %852 = vperm.xlu2 %1369, %v1636_v21   ;;  %742 = vperm.xlu1 %1366, %v1647_v28  }
  0xd0   : > { %1365 = vset.pattern.permute.xlu0 %v1478_v26 }
  0xd1   : > { %738 = vperm.xlu0 %1365, %v1636_v21  }
  0xd7   : > { %856 = vperm.xlu2 %1369, %v1647_v28   ;;  %1368 = vset.pattern.permute.xlu1 %v1475_v22 }
  0xd8   : > { %799 = vperm.xlu1 %1368, %v1647_v28  }
  0xd9   : > { %1370 = vset.pattern.permute.xlu0 %v1474_v14 }
  0xda   : > { %557 = vperm.xlu0 %1370, %v535_v32  }
  0xdf   : > { %1374 = vset.pattern.permute.xlu2 %v1475_v22 }
  0xe0   : > { %783 = vperm.xlu2 %1374, %v535_v32   ;;  %1371 = vset.pattern.permute.xlu1 %v1473_v13 }
  0xe1   : > { %612 = vperm.xlu1 %1371, %v535_v32  }
  0xe2   : > { %1381 = vset.pattern.permute.xlu0 %v1478_v26 }
  0xe3   : > { %746 = vperm.xlu0 %1381, %v1670_v35  }
  0xe8   : > { %1376 = vset.pattern.permute.xlu2 %v1477_v25 }
  0xe9   : > { %897 = vperm.xlu2 %1376, %v535_v32   ;;  %1372 = vset.pattern.permute.xlu1 %v1476_v23 }
  0xea   : > { %669 = vperm.xlu1 %1372, %v535_v32  }
  0xeb   : > { %730 = vperm.xlu0 %1381, %v1677_v38  }
  0xf1   : > { %1378 = vset.pattern.permute.xlu2 %v1474_v14 }
  0xf2   : > { %582 = vperm.xlu2 %1378, %v1670_v35   ;;  %1373 = vset.pattern.permute.xlu1 %v1478_v26 }
  0xf3   : > { %1390 = vset.pattern.permute.xlu0 %v1474_v14  ;;  %726 = vperm.xlu1 %1373, %v535_v32  }
  0xf4   : > { %587 = vperm.xlu0 %1390, %v1683_v41  }
  0xfa   : > { %1380 = vset.pattern.permute.xlu2 %v1476_v23 }
  0xfb   : > { %689 = vperm.xlu2 %1380, %v1670_v35   ;;  %1375 = vset.pattern.permute.xlu1 %v1479_v29 }
  0xfc   : > { %1393 = vset.pattern.permute.xlu0 %v1478_v26  ;;  %840 = vperm.xlu1 %1375, %v535_v32   ;;  %v1695_v43 = vpop.permute.xlu2 %950 }
  0xfd   : > { %750 = vperm.xlu0 %1393, %v1683_v41  }
 0x103   : > { %1383 = vset.pattern.permute.xlu2 %v1474_v14 }
 0x104   : > { %562 = vperm.xlu2 %1383, %v1677_v38   ;;  %1377 = vset.pattern.permute.xlu1 %v1472_v12 }
 0x105   : > { %1398 = vset.pattern.permute.xlu0 %v1479_v29  ;;  %954 = vperm.xlu1 %1377, %v535_v32   ;;  %v573_v46 = vpop.permute.xlu2 %572  ;;  %v981_v32 = vmul.f32 %v1283_v20, %v1695_v43 }
 0x106   : > { %848 = vperm.xlu0 %1398, %v1698_v45  }
 0x10c   : > { %1384 = vset.pattern.permute.xlu2 %v1473_v13 }
 0x10d   : > { %616 = vperm.xlu2 %1384, %v1677_v38   ;;  %1379 = vset.pattern.permute.xlu1 %v1473_v13 }
 0x10e   : > { %1399 = vset.pattern.permute.xlu0 %v1477_v25  ;;  %632 = vperm.xlu1 %1379, %v1670_v35  }
 0x10f   : > { %909 = vperm.xlu0 %1399, %v1636_v21   ;;  %v682_v47 = vpop.permute.xlu2 %681 }
 0x114   : > { %v609_v50 = vpop.permute.xlu1 %608 }
 0x115   : > { %1385 = vset.pattern.permute.xlu2 %v1476_v23  ;;  %v639_v51 = vmul.f32 %v1235_v48, %v609_v50  ;;  %v553_v52 = vpop.permute.xlu0 %552  ;;  %v1256_v48 = vld [vmem:[%s2104_s3 + $0xe8] sm:$0xff]  ;;  %v1255_v50 = vld [vmem:[%s2104_s3 + $0xe0] sm:$0xff] }
 0x116   : > { %v590_v53 = vmul.f32 %v553_v52, %v542_v49  ;;  %673 = vperm.xlu2 %1385, %v1677_v38   ;;  %1382 = vset.pattern.permute.xlu1 %v1475_v22  ;;  %v1263_v52 = vld [vmem:[%s2104_s3 + $0x120] sm:$0xff] }
 0x117   : > { %1405 = vset.pattern.permute.xlu0 %v1472_v12  ;;  %803 = vperm.xlu1 %1382, %v1670_v35   ;;  %v686_v54 = vpop.permute.xlu2 %685 }
 0x118   : > { %v647_v55 = vadd.f32 %v639_v51, %v590_v53  ;;  %966 = vperm.xlu0 %1405, %v1636_v21   ;;  %v700_v21 = vmul.f32 %v1247_v10, %v682_v47 }
 0x11e   : > { %1386 = vset.pattern.permute.xlu2 %v1475_v22  ;;  %v780_v57 = vpop.permute.xlu1 %779  ;;  %v666_v58 = vpop.permute.xlu0 %665 }
 0x11f   : > { %v696_v59 = vmul.f32 %v1243_v56, %v666_v58  ;;  %787 = vperm.xlu2 %1386, %v1677_v38   ;;  %1388 = vset.pattern.permute.xlu1 %v1477_v25  ;;  %v810_v4 = vmul.f32 %v1259_v0, %v780_v57  ;;  %v1271_v57 = vld [vmem:[%s2104_s3 + $0x160] sm:$0xff] }
 0x120   : > { %974 = vperm.xlu0 %1405, %v1670_v35   ;;  %v1730_v60 = vpop.permute.xlu2 %795  ;;  %901 = vperm.xlu1 %1388, %v1677_v38  }
 0x121   : > { %v704_v61 = vadd.f32 %v696_v59, %v647_v55 }
 0x127   : > { %1387 = vset.pattern.permute.xlu2 %v1479_v29  ;;  %v894_v63 = vpop.permute.xlu1 %893 }
 0x128   : > { %v723_v1 = vpop.permute.xlu0 %722  ;;  %844 = vperm.xlu2 %1387, %v1677_v38   ;;  %1391 = vset.pattern.permute.xlu1 %v1473_v13  ;;  %v594_v13 = vmul.f32 %v573_v46, %v546_v7  ;;  %v924_v27 = vmul.f32 %v1275_v15, %v894_v63  ;;  %v701_v46 = vmul.f32 %v1248_v40, %v686_v54  ;;  %v1272_v63 = vld [vmem:[%s2104_s3 + $0x168] sm:$0xff] }
 0x129   : > { %v753_v2 = vmul.f32 %v1251_v62, %v723_v1  ;;  %v853_v3 = vpop.permute.xlu2 %852  ;;  %636 = vperm.xlu1 %1391, %v1683_v41   ;;  %v1264_v62 = vld [vmem:[%s2104_s3 + $0x128] sm:$0xff] }
 0x12a   : > { %v871_v59 = vmul.f32 %v1271_v57, %v853_v3  ;;  %v543_v7 = vld [vmem:[%s2104_s3 + $0x8] sm:$0xff] }
 0x12b   : > { %v761_v5 = vadd.f32 %v753_v2, %v704_v61 }
 0x12d   : > { %v818_v6 = vadd.f32 %v810_v4, %v761_v5 }
 0x130   : > { %1389 = vset.pattern.permute.xlu2 %v1472_v12  ;;  %v625_v11 = vpop.permute.xlu1 %624 }
 0x131   : > { %v643_v16 = vmul.f32 %v1239_v8, %v625_v11  ;;  %v837_v17 = vpop.permute.xlu0 %836  ;;  %958 = vperm.xlu2 %1389, %v1677_v38   ;;  %620 = vperm.xlu1 %1391, %v1698_v45   ;;  %v857_v19 = vpop.permute.xlu2 %856  ;;  %v547_v38 = vld [vmem:[%s2104_s3 + $0x28] sm:$0xff] }
 0x132   : > { %v867_v18 = vmul.f32 %v1267_v9, %v837_v17  ;;  %v872_v3 = vmul.f32 %v1272_v63, %v857_v19  ;;  %v1236_v8 = vld [vmem:[%s2104_s3 + $0x48] sm:$0xff]  ;;  %v1265_v63 = vld [vmem:[%s2104_s3 + $0x130] sm:$0xff] }
 0x133   : > { %v651_v24 = vadd.f32 %v643_v16, %v594_v13  ;;  %v1252_v19 = vld [vmem:[%s2104_s3 + $0xc8] sm:$0xff] }
 0x134   : > { %v875_v30 = vadd.f32 %v867_v18, %v818_v6  ;;  %v544_v18 = vld [vmem:[%s2104_s3 + $0x10] sm:$0xff] }
 0x135   : > { %v708_v31 = vadd.f32 %v700_v21, %v651_v24 }
 0x136   : > { %v932_v33 = vadd.f32 %v924_v27, %v875_v30 }
 0x138   : > { %v1768_v36 = vadd.f32 %v981_v32, %v932_v33  ;;  %v629_v37 = vpop.permute.xlu1 %628 }
 0x139   : > { %v644_v39 = vmul.f32 %v1240_v34, %v629_v37  ;;  %1392 = vset.pattern.permute.xlu2 %v1476_v23  ;;  %1396 = vset.pattern.permute.xlu1 %v1478_v26  ;;  %v1268_v37 = vld [vmem:[%s2104_s3 + $0x148] sm:$0xff] }
 0x13a   : > { %v578_v42 = vpop.permute.xlu0 %577  ;;  %693 = vperm.xlu2 %1392, %v1683_v41   ;;  %734 = vperm.xlu1 %1396, %v1698_v45   ;;  %v1780_v43 = vpop.permute.xlu2 %783 }
 0x13b   : > { %v595_v44 = vmul.f32 %v578_v42, %v547_v38  ;;  %v1276_v38 = vld [vmem:[%s2104_s3 + $0x188] sm:$0xff] }
 0x13d   : > { %v652_v47 = vadd.f32 %v644_v39, %v595_v44 }
 0x13f   : > { %v709_v49 = vadd.f32 %v701_v46, %v652_v47  ;;  %v1284_v46 = vld [vmem:[%s2104_s3 + $0x1c8] sm:$0xff] }
 0x141   : > { %v743_v26 = vpop.permute.xlu1 %742 }
 0x142   : > { %v758_v51 = vmul.f32 %v1256_v48, %v743_v26  ;;  %1394 = vset.pattern.permute.xlu2 %v1474_v14  ;;  %1397 = vset.pattern.permute.xlu1 %v1475_v22  ;;  %v814_v14 = vmul.f32 %v1263_v52, %v1730_v60 }
 0x143   : > { %v739_v53 = vpop.permute.xlu0 %738  ;;  %567 = vperm.xlu2 %1394, %v1698_v45   ;;  %791 = vperm.xlu1 %1397, %v1698_v45   ;;  %v898_v56 = vpop.permute.xlu2 %897 }
 0x144   : > { %v766_v54 = vadd.f32 %v758_v51, %v709_v49  ;;  %v757_v55 = vmul.f32 %v1255_v50, %v739_v53  ;;  %v925_v40 = vmul.f32 %v1276_v38, %v898_v56  ;;  %v1241_v53 = vld [vmem:[%s2104_s3 + $0x70] sm:$0xff] }
 0x145   : > { %v1245_v56 = vld [vmem:[%s2104_s3 + $0x90] sm:$0xff] }
 0x146   : > { %v765_v58 = vadd.f32 %v757_v55, %v708_v31 }
 0x148   : > { %v822_v61 = vadd.f32 %v814_v14, %v765_v58  ;;  %v1257_v58 = vld [vmem:[%s2104_s3 + $0xf0] sm:$0xff] }
 0x14a   : > { %v800_v0 = vpop.permute.xlu1 %799  ;;  %v1805_v1 = vadd.f32 %v871_v59, %v822_v61 }
 0x14b   : > { %v815_v2 = vmul.f32 %v1264_v62, %v800_v0  ;;  %1395 = vset.pattern.permute.xlu2 %v1476_v23  ;;  %1401 = vset.pattern.permute.xlu1 %v1477_v25  ;;  %v1253_v62 = vld [vmem:[%s2104_s3 + $0xd0] sm:$0xff] }
 0x14c   : > { %677 = vperm.xlu2 %1395, %v1698_v45   ;;  %905 = vperm.xlu1 %1401, %v1698_v45   ;;  %v1811_v60 = vpop.permute.xlu2 %582  ;;  %v558_v9 = vpop.permute.xlu0 %557 }
 0x14d   : > { %v823_v4 = vadd.f32 %v815_v2, %v766_v54  ;;  %v591_v10 = vmul.f32 %v558_v9, %v543_v7  ;;  %v1269_v9 = vld [vmem:[%s2104_s3 + $0x150] sm:$0xff] }
 0x14f   : > { %v1813_v5 = vadd.f32 %v872_v3, %v823_v4 }
 0x153   : > { %v613_v6 = vpop.permute.xlu1 %612 }
 0x154   : > { %1400 = vset.pattern.permute.xlu2 %v1475_v22  ;;  %1402 = vset.pattern.permute.xlu1 %v1472_v12  ;;  %v640_v11 = vmul.f32 %v1236_v8, %v613_v6  ;;  %v1244_v22 = vld [vmem:[%s2104_s3 + $0x88] sm:$0xff] }
 0x155   : > { %807 = vperm.xlu2 %1400, %v1683_v41   ;;  %962 = vperm.xlu1 %1402, %v1698_v45   ;;  %v690_v23 = vpop.permute.xlu2 %689  ;;  %v747_v51 = vpop.permute.xlu0 %746 }
 0x156   : > { %v648_v15 = vadd.f32 %v640_v11, %v591_v10  ;;  %v759_v0 = vmul.f32 %v1257_v58, %v747_v51 }
 0x15c   : > { %v670_v13 = vpop.permute.xlu1 %669 }
 0x15d   : > { %v697_v16 = vmul.f32 %v1244_v22, %v670_v13  ;;  %1404 = vset.pattern.permute.xlu2 %v1477_v25  ;;  %1403 = vset.pattern.permute.xlu1 %v1479_v29  ;;  %v1260_v25 = vld [vmem:[%s2104_s3 + $0x108] sm:$0xff]  ;;  %v1237_v29 = vld [vmem:[%s2104_s3 + $0x50] sm:$0xff]  ;;  %v731_v2 = vpop.permute.xlu0 %730 }
 0x15e   : > { %913 = vperm.xlu2 %1404, %v1647_v28   ;;  %860 = vperm.xlu1 %1403, %v1670_v35   ;;  %v563_v45 = vpop.permute.xlu2 %562  ;;  %v811_v30 = vmul.f32 %v1260_v25, %v1780_v43  ;;  %v755_v3 = vmul.f32 %v1253_v62, %v731_v2  ;;  %v1286_v62 = vld [vmem:[%s2104_s3 + $0x1d8] sm:$0xff] }
 0x15f   : > { %v705_v17 = vadd.f32 %v697_v16, %v648_v15  ;;  %v592_v21 = vmul.f32 %v563_v45, %v544_v18  ;;  %v1277_v15 = vld [vmem:[%s2104_s3 + $0x190] sm:$0xff] }
 0x160   : > { %v1285_v45 = vld [vmem:[%s2104_s3 + $0x1d0] sm:$0xff] }
 0x165   : > { %v727_v20 = vpop.permute.xlu1 %726 }
 0x166   : > { %v754_v24 = vmul.f32 %v1252_v19, %v727_v20  ;;  %917 = vperm.xlu2 %1404, %v1670_v35   ;;  %864 = vperm.xlu1 %1403, %v1683_v41  }
 0x167   : > { %v617_v27 = vpop.permute.xlu2 %616 }
 0x168   : > { %v762_v31 = vadd.f32 %v754_v24, %v705_v17  ;;  %v641_v32 = vmul.f32 %v1237_v29, %v617_v27 }
 0x16a   : > { %v649_v33 = vadd.f32 %v641_v32, %v592_v21  ;;  %v819_v34 = vadd.f32 %v811_v30, %v762_v31  ;;  %v588_v30 = vpop.permute.xlu0 %587 }
 0x16e   : > { %921 = vperm.xlu2 %1404, %v1683_v41   ;;  %1406 = vset.pattern.permute.xlu1 %v1472_v12  ;;  %v841_v35 = vpop.permute.xlu1 %840  ;;  %v997_v12 = vsel %vm468_vm0, %v1768_v36, 0.0 }
 0x16f   : > { %v868_v39 = vmul.f32 %v1268_v37, %v841_v35  ;;  %970 = vperm.xlu1 %1406, %v1647_v28   ;;  %v548_v28 = vld [vmem:[%s2104_s3 + $0x30] sm:$0xff] }
 0x170   : > { %v674_v44 = vpop.permute.xlu2 %673  ;;  %v596_v36 = vmul.f32 %v1811_v60, %v548_v28 }
 0x171   : > { %v876_v42 = vadd.f32 %v868_v39, %v819_v34  ;;  %v698_v59 = vmul.f32 %v1245_v56, %v674_v44  ;;  %v1238_v39 = vld [vmem:[%s2104_s3 + $0x58] sm:$0xff] }
 0x172   : > { %v1902_v34 = vpop.permute.xlu0 %750  ;;  %v1246_v44 = vld [vmem:[%s2104_s3 + $0x98] sm:$0xff] }
 0x173   : > { %v933_v43 = vadd.f32 %v925_v40, %v876_v42  ;;  %v706_v4 = vadd.f32 %v698_v59, %v649_v33  ;;  %v545_v40 = vld [vmem:[%s2104_s3 + $0x18] sm:$0xff] }
 0x175   : > { %v763_v11 = vadd.f32 %v755_v3, %v706_v4 }
 0x177   : > { %978 = vperm.xlu1 %1406, %v1683_v41   ;;  %v955_v47 = vpop.permute.xlu1 %954  ;;  %v1249_v41 = vld [vmem:[%s2104_s3 + $0xb0] sm:$0xff] }
 0x178   : > { %v982_v48 = vmul.f32 %v1284_v46, %v955_v47  ;;  %v702_v57 = vmul.f32 %v1249_v41, %v690_v23  ;;  %v1261_v23 = vld [vmem:[%s2104_s3 + $0x110] sm:$0xff] }
 0x179   : > { %v788_v52 = vpop.permute.xlu2 %787 }
 0x17a   : > { %v990_v49 = vadd.f32 %v982_v48, %v933_v43  ;;  %v812_v22 = vmul.f32 %v1261_v23, %v788_v52  ;;  %v849_v35 = vpop.permute.xlu0 %848 }
 0x17c   : > { %v998_v26 = vsel %vm468_vm0, %v990_v49, 0.0  ;;  %v820_v16 = vadd.f32 %v812_v22, %v763_v11  ;;  %v1254_v49 = vld [vmem:[%s2104_s3 + $0xd8] sm:$0xff] }
 0x17d   : > { %v999_v50 = vadd.f32 %v998_v26, %v997_v12 }
 0x180   : > { %v633_v54 = vpop.permute.xlu1 %632 }
 0x181   : > { %v645_v55 = vmul.f32 %v1241_v53, %v633_v54  ;;  %v1270_v54 = vld [vmem:[%s2104_s3 + $0x158] sm:$0xff] }
 0x182   : > { %v845_v60 = vpop.permute.xlu2 %844  ;;  %v910_v48 = vpop.permute.xlu0 %909  ;;  %v870_v58 = vmul.f32 %v1270_v54, %v849_v35 }
 0x183   : > { %v653_v14 = vadd.f32 %v645_v55, %v596_v36  ;;  %v869_v13 = vmul.f32 %v1269_v9, %v845_v60  ;;  %v1279_v36 = vld [vmem:[%s2104_s3 + $0x1a0] sm:$0xff]  ;;  %v1278_v55 = vld [vmem:[%s2104_s3 + $0x198] sm:$0xff] }
 0x184   : > { %v928_v59 = vmul.f32 %v1279_v36, %v910_v48  ;;  %v1026_v48 = vld [vmem:[%s2108_s7 + $0x8] sm:$0xff] }
 0x185   : > { %v710_v61 = vadd.f32 %v702_v57, %v653_v14  ;;  %v877_v19 = vadd.f32 %v869_v13, %v820_v16  ;;  %v1287_v57 = vld [vmem:[%s2104_s3 + $0x1e0] sm:$0xff]  ;;  %v549_v16 = vld [vmem:[%s2104_s3 + $0x38] sm:$0xff]  ;;  %1045 = vmatpush.msra.mxu1 %v1026_v48 }
 0x186   : > { %v936_v3 = vadd.f32 %v928_v59, %v1805_v1  ;;  %v1242_v1 = vld [vmem:[%s2104_s3 + $0x78] sm:$0xff]  ;;  %v1081_v59 = vld [vmem:[%s2110_s9 + $0x20] sm:$0xff] }
 0x187   : > { %v767_v7 = vadd.f32 %v759_v0, %v710_v61  ;;  %v1119_v48 = vld [vmem:[%s2113_s12] sm:$0x1] }
 0x189   : > { %v804_v6 = vpop.permute.xlu1 %803 }
 0x18a   : > { %v816_v8 = vmul.f32 %v1265_v63, %v804_v6  ;;  %v967_v14 = vpop.permute.xlu0 %966 }
 0x18b   : > { %v959_v17 = vpop.permute.xlu2 %958  ;;  %v985_v63 = vmul.f32 %v1287_v57, %v967_v14 }
 0x18c   : > { %v1891_v10 = vadd.f32 %v816_v8, %v767_v7  ;;  %v983_v20 = vmul.f32 %v1285_v45, %v959_v17  ;;  %v1273_v45 = vld [vmem:[%s2104_s3 + $0x170] sm:$0xff]  ;;  %v597_v17 = vmul.f32 %v588_v30, %v549_v16  ;;  %v1280_v30 = vld [vmem:[%s2104_s3 + $0x1a8] sm:$0xff] }
 0x18d   : > { %v993_v23 = vadd.f32 %v985_v63, %v936_v3 }
 0x18f   : > { %v1004_v11 = vsel %vm468_vm0, %v993_v23, 0.0 }
 0x192   : > { %v902_v18 = vpop.permute.xlu1 %901 }
 0x193   : > { %v926_v25 = vmul.f32 %v1277_v15, %v902_v18 }
 0x194   : > { %v1900_v32 = vpop.permute.xlu2 %693 }
 0x195   : > { %v934_v29 = vadd.f32 %v926_v25, %v877_v19  ;;  %v1023_v19 = vld [vmem:[%s2107_s6 + $0x18] sm:$0xff]  ;;  %v1022_v25 = vld [vmem:[%s2107_s6 + $0x10] sm:$0xff] }
 0x196   : > { %1066 = vmatpush.msrb.mxu2 %v1023_v19 }
 0x197   : > { %v991_v21 = vadd.f32 %v983_v20, %v934_v29 }
 0x198   : > { %1067 = vmatpush.msrb.mxu2 %v1022_v25 }
 0x199   : > { %v1000_v24 = vsel %vm468_vm0, %v991_v21, 0.0  ;;  %v1250_v21 = vld [vmem:[%s2104_s3 + $0xb8] sm:$0xff] }
 0x19a   : > { %v1001_v27 = vadd.f32 %v1000_v24, %v999_v50  ;;  %v1262_v50 = vld [vmem:[%s2104_s3 + $0x118] sm:$0xff]  ;;  %v1021_v24 = vld [vmem:[%s2107_s6 + $0x8] sm:$0xff] }
 0x19b   : > { %v637_v31 = vpop.permute.xlu1 %636  ;;  %1068 = vmatpush.msrb.mxu2 %v1021_v24  ;;  %v1117_v24 = vld [vmem:[%s2112_s11 + $0x30] sm:$0xff] }
 0x19c   : > { %v646_v18 = vmul.f32 %v1242_v1, %v637_v31  ;;  %v1281_v31 = vld [vmem:[%s2104_s3 + $0x1b0] sm:$0xff] }
 0x19d   : > { %v568_v38 = vpop.permute.xlu2 %567 }
 0x19e   : > { %v593_v47 = vmul.f32 %v568_v38, %v545_v40  ;;  %v703_v38 = vmul.f32 %v1250_v21, %v1900_v32  ;;  %v1266_v40 = vld [vmem:[%s2104_s3 + $0x138] sm:$0xff]  ;;  %v975_v32 = vpop.permute.xlu0 %974 }
 0x19f   : > { %v1118_v21 = vld [vmem:[%s2112_s11 + $0x38] sm:$0xff] }
 0x1a3   : > { %v621_v33 = vpop.permute.xlu1 %620 }
 0x1a4   : > { %v642_v43 = vmul.f32 %v1238_v39, %v621_v33  ;;  %v1258_v39 = vld [vmem:[%s2104_s3 + $0xf8] sm:$0xff] }
 0x1a6   : > { %v678_v46 = vpop.permute.xlu2 %677  ;;  %v650_v12 = vadd.f32 %v642_v43, %v593_v47  ;;  %v1288_v47 = vld [vmem:[%s2104_s3 + $0x1e8] sm:$0xff] }
 0x1a7   : > { %v699_v26 = vmul.f32 %v1246_v44, %v678_v46  ;;  %v1274_v46 = vld [vmem:[%s2104_s3 + $0x178] sm:$0xff] }
 0x1a9   : > { %v707_v51 = vadd.f32 %v699_v26, %v650_v12  ;;  %v760_v12 = vmul.f32 %v1258_v39, %v1902_v34 }
 0x1ac   : > { %v735_v37 = vpop.permute.xlu1 %734 }
 0x1ad   : > { %v756_v28 = vmul.f32 %v1254_v49, %v735_v37  ;;  %v1020_v37 = vld [vmem:[%s2107_s6] sm:$0xff] }
 0x1ae   : > { %1069 = vmatpush.msrb.mxu2 %v1020_v37  ;;  %v1025_v49 = vld [vmem:[%s2108_s7] sm:$0xff] }
 0x1af   : > { %v764_v41 = vadd.f32 %v756_v28, %v707_v51  ;;  %v808_v2 = vpop.permute.xlu2 %807  ;;  %v1024_v28 = vld [vmem:[%s451_s17] sm:$0x1]  ;;  %v1084_v51 = vld [vmem:[%s2110_s9 + $0x38] sm:$0xff]  ;;  %1046 = vmatpush.msra.mxu1 %v1025_v49  ;;  %s1424_s17 = scalar_lea.hbm %s1423_s21, 1 }
 0x1b0   : > { %v817_v26 = vmul.f32 %v1266_v40, %v808_v2  ;;  %1098 = vmatpush.msrb.mxu3 %v1084_v51  ;;  %1291 = vmatmul.msk.f32.vlgmr.msra.gmra.mxu1 %vm1027_vm1, %v1024_v28  ;;  %p1425_p11 = scmp.ne.s32.totalorder %s1423_s21, %s1424_s17  ;;  %p1430_p1 = scmp.lt.s32.totalorder %s1428_s22, %s1424_s17 }
 0x1b1   : > { %1131 = vmatpush.msrb.mxu1 %v1118_v21 }
 0x1b2   : > { %p1426_p12 = pnand %p1425_p11, %p1588_p5  ;;  %p1431_p2 = por %p1430_p1, %p1429_p0 }
 0x1b3   : > { %1132 = vmatpush.msrb.mxu1 %v1117_v24 }
 0x1b4   : > { %p1427_p13 = pneg %p1426_p12 }
 0x1b5   : > { %v792_v42 = vpop.permute.xlu1 %791 }
 0x1b6   : > { %v813_v52 = vmul.f32 %v1262_v50, %v792_v42  ;;  %v1289_v42 = vld [vmem:[%s2104_s3 + $0x1f0] sm:$0xff]  ;;  %p1432_p3 = pnand %p1431_p2, %p1427_p13 }
 0x1b8   : > { %v821_v56 = vadd.f32 %v813_v52, %v764_v41  ;;  %v914_v15 = vpop.permute.xlu2 %913  ;;  %v1083_v52 = vld [vmem:[%s2110_s9 + $0x30] sm:$0xff] }
 0x1b9   : > { %1099 = vmatpush.msrb.mxu3 %v1083_v52 }
 0x1ba   : > { %v878_v0 = vadd.f32 %v870_v58, %v821_v56  ;;  %v1082_v56 = vld [vmem:[%s2110_s9 + $0x28] sm:$0xff] }
 0x1bb   : > { %1100 = vmatpush.msrb.mxu3 %v1082_v56 }
 0x1bd   : > { %1101 = vmatpush.msrb.mxu3 %v1081_v59 }
 0x1be   : > { %v906_v53 = vpop.permute.xlu1 %905 }
 0x1bf   : > { %v927_v61 = vmul.f32 %v1278_v55, %v906_v53  ;;  %v987_v53 = vmul.f32 %v1289_v42, %v975_v32  ;;  %v1113_v42 = vld [vmem:[%s2112_s11 + $0x10] sm:$0xff]  ;;  %v1112_v32 = vld [vmem:[%s2112_s11 + $0x8] sm:$0xff] }
 0x1c0   : > { %v918_v33 = vpop.permute.xlu2 %917 }
 0x1c1   : > { %v935_v4 = vadd.f32 %v927_v61, %v878_v0  ;;  %v930_v44 = vmul.f32 %v1281_v31, %v918_v33  ;;  %v1080_v0 = vld [vmem:[%s2110_s9 + $0x18] sm:$0xff] }
 0x1c2   : > { %1102 = vmatpush.msrb.mxu3 %v1080_v0  ;;  %v1114_v31 = vld [vmem:[%s2112_s11 + $0x18] sm:$0xff] }
 0x1c7   : > { %v963_v60 = vpop.permute.xlu1 %962 }
 0x1c8   : > { %v984_v6 = vmul.f32 %v1286_v62, %v963_v60  ;;  %v922_v61 = vpop.permute.xlu2 %921  ;;  %v1290_v60 = vld [vmem:[%s2104_s3 + $0x1f8] sm:$0xff] }
 0x1ca   : > { %v992_v7 = vadd.f32 %v984_v6, %v935_v4  ;;  %v1079_v6 = vld [vmem:[%s2110_s9 + $0x10] sm:$0xff] }
 0x1cb   : > { %1103 = vmatpush.msrb.mxu3 %v1079_v6 }
 0x1cc   : > { %v1002_v8 = vsel %vm468_vm0, %v992_v7, 0.0 }
 0x1cd   : > { %v1003_v9 = vadd.f32 %v1002_v8, %v1001_v27  ;;  %v654_v27 = vadd.f32 %v646_v18, %v597_v17  ;;  %v1018_v18 = vld [vmem:[%s2105_s4] sm:$0x1] }
 0x1cf   : > { %v1937_v22 = vadd.f32 %v1004_v11, %v1003_v9  ;;  %v711_v43 = vadd.f32 %v703_v38, %v654_v27  ;;  %v1116_v27 = vld [vmem:[%s2112_s11 + $0x28] sm:$0xff]  ;;  %v1074_v38 = vld [vmem:[%s2109_s8] sm:$0x1] }
 0x1d0   : > { %v861_v13 = vpop.permute.xlu1 %860  ;;  %1133 = vmatpush.msrb.mxu1 %v1116_v27 }
 0x1d1   : > { %v873_v20 = vmul.f32 %v1273_v45, %v861_v13  ;;  %v768_v54 = vadd.f32 %v760_v12, %v711_v43  ;;  %v1111_v43 = vld [vmem:[%s2112_s11] sm:$0xff] }
 0x1d3   : > { %v881_v35 = vadd.f32 %v873_v20, %v1891_v10  ;;  %v929_v10 = vmul.f32 %v1280_v30, %v914_v15  ;;  %v825_v57 = vadd.f32 %v817_v26, %v768_v54  ;;  %v1078_v20 = vld [vmem:[%s2110_s9 + $0x8] sm:$0xff]  ;;  %v1115_v30 = vld [vmem:[%s2112_s11 + $0x20] sm:$0xff] }
 0x1d4   : > { %1104 = vmatpush.msrb.mxu3 %v1078_v20  ;;  %1134 = vmatpush.msrb.mxu1 %v1115_v30 }
 0x1d5   : > { %v938_v50 = vadd.f32 %v930_v44, %v881_v35  ;;  %v937_v36 = vadd.f32 %v929_v10, %v1813_v5  ;;  %v1282_v5 = vld [vmem:[%s2104_s3 + $0x1b8] sm:$0xff]  ;;  %v1085_v10 = vld [vmem:[%s2111_s10] sm:$0x1] }
 0x1d6   : > { %v931_v3 = vmul.f32 %v1282_v5, %v922_v61  ;;  %1135 = vmatpush.msrb.mxu1 %v1114_v31 }
 0x1d7   : > { %v995_v14 = vadd.f32 %v987_v53, %v938_v50 }
 0x1d8   : > { %v865_v29 = vpop.permute.xlu1 %864  ;;  %1136 = vmatpush.msrb.mxu1 %v1113_v42 }
 0x1d9   : > { %v874_v34 = vmul.f32 %v1274_v46, %v865_v29  ;;  %v1008_v4 = vsel %vm468_vm0, %v995_v14, 0.0  ;;  %v1077_v29 = vld [vmem:[%s2110_s9] sm:$0xff] }
 0x1da   : > { %1105 = vmatpush.msrb.mxu3 %v1077_v29  ;;  %1137 = vmatpush.msrb.mxu1 %v1112_v32 }
 0x1db   : > { %v882_v62 = vadd.f32 %v874_v34, %v825_v57 }
 0x1dc   : > { %1138 = vmatpush.msrb.mxu1 %v1111_v43 }
 0x1dd   : > { %v939_v8 = vadd.f32 %v931_v3, %v882_v62 }
 0x1e1   : > { %v971_v41 = vpop.permute.xlu1 %970 }
 0x1e2   : > { %v986_v55 = vmul.f32 %v1288_v47, %v971_v41 }
 0x1e4   : > { %v994_v58 = vadd.f32 %v986_v55, %v937_v36 }
 0x1e6   : > { %v1006_v63 = vsel %vm468_vm0, %v994_v58, 0.0 }
 0x1e7   : > { %v1007_v2 = vadd.f32 %v1006_v63, %v1937_v22 }
 0x1e9   : > { %v979_v23 = vpop.permute.xlu1 %978  ;;  %v1009_v7 = vadd.f32 %v1008_v4, %v1007_v2 }
 0x1ea   : > { %v988_v9 = vmul.f32 %v1290_v60, %v979_v23 }
 0x1ec   : > { %v996_v11 = vadd.f32 %v988_v9, %v939_v8 }
 0x1ee   : > { %v1010_v22 = vsel %vm468_vm0, %v996_v11, 0.0 }
 0x1ef   : > { %v1011_v13 = vadd.f32 %v1010_v22, %v1009_v7 }
 0x1f1   : > { %v1012_v15 = vrot.slane %v1011_v13, 4 }
 0x1f3   : > { %v1013_v16 = vadd.f32 %v1012_v15, %v1011_v13 }
 0x1f5   : > { %v1014_v1 = vrot.slane %v1013_v16, 2 }
 0x1f7   : > { %v1015_v45 = vadd.f32 %v1014_v1, %v1013_v16 }
 0x1f9   : > { %v1016_v17 = vrot.slane %v1015_v45, 1 }
 0x1fb   : > { %v1017_v19 = vadd.f32 %v1016_v17, %v1015_v45 }
 0x1fd   : > { %v1019_v25 = vadd.f32 %v1018_v18, %v1017_v19 }
 0x1ff   : > { %1292 = vmatmul.msk.f32.vlgmr.msrb.gmra.mxu2 %vm468_vm0, %v1019_v25 }
 0x22d   : > { %v1048_v33 = vpop.f32.mrf.mxu1 }
 0x282   : > { %v1071_v37 = vpop.f32.mrf.mxu2 }
 0x283   : > { %v1072_v35 = vadd.f32 %v1071_v37, %v1048_v33 }
 0x285   : > { %v1075_v39 = vadd.f32 %v1074_v38, %v1072_v35 }
 0x287   : > { %v1076_v40 = vmax.f32 %v1075_v39, 0.0 }
 0x289   : > { %1293 = vmatmul.msk.f32.vlgmr.msrb.gmra.mxu3 %vm1086_vm2, %v1076_v40 }
 0x30c   : > { %v1107_v44 = vpop.f32.mrf.mxu3 }
 0x30d   : > { %v1108_v46 = vadd.f32 %v1107_v44, %v1085_v10 }
 0x30f   : > { %v1110_v47 = vmax.f32 %v1108_v46, 0.0 }
 0x311   : > { %1294 = vmatmul.msk.f32.vlgmr.msrb.gmra.mxu1 %vm1086_vm2, %v1110_v47 }
 0x38e   : > { %v1140_v49 = vpop.f32.mrf.mxu1 }
 0x38f   : > { %v1141_v12 = vadd.f32 %v1140_v49, %v1119_v48 }
 0x391   : > { %1143 = vst [vmem:[%s443_s2] sm:$0x1] %v1141_v12 }
 0x392   : > { %1435 = shalt.err (!%p1432_p3)
}
 0x393   : > { %1306 = dma.vmem_to_hbm [thread:$0]  (%p1588_p5), %s1156_s30, 16, %s1158_s16, %s1145_s20  }
 0x394 PF: > { %p1312_p4 = scmp.ge.s32.totalorder %s1470_s28, 2  ;;  %s1169_s0 = sand.u32 1, %s1458_s25  }
 0x395   : > { %s1170_s23 = scalar_lea.sflag [#allocation3], %s1169_s0 }
 0x396   : > { %p1309_p7 = pnand %p1312_p4, %p1592_p6 }
 0x398   : > { %p1310_p8 = pneg %p1309_p7 }
 0x39a   : > { %1453 = dma.done.wait (%p1310_p8), %s1170_s23, 16  }
 0x39b   : > { %1455 = vsyncadd (%p1310_p8), %s1170_s23, 4294967280  ;;  %s2124_s2 = sld [smem:[#allocation5_spill]]  ;;  %p23_p9 = scmp.ge.s32.totalorder %s1575_s14, 4  }
 0x39c   : > { %s2125_s25 = smov %s1462_s26  ;;  %s2126_s26 = smov %s1466_s27 }
 0x39d   : > { %s2128_s28 = smov %s1575_s14  ;;  %25 = sbr.rel (!%p23_p9) target bundleno = 7 (0x7), region = 117 }
 0x3a1   : > { %s2127_s27 = smov %s2124_s2 }
 0x3a2   :  { %1175 = vsyncpa [#allocation3], 1 }
 0x3a3   :  { %1177 = vsyncpa [#allocation3 + $0x1], 1 }

</bundles_post_ra>
